<compile_context>
chip_gen: v7x
topology: tpu7x:2x2x1
jax: 0.10.0
libtpu: 0.0.40
codegen_flags: <defaults>
</compile_context>

<pallas_src>
import jax
import jax.numpy as jnp
from jax import lax
from jax.experimental import pallas as pl
from jax.experimental.pallas import tpu as pltpu

NUM_CLASSES = 12

# Tile caps (bf16 activations): x tile = TB*TK*2B <= 4 MiB per buffer.
_TB_MAX = 512
_TK_MAX = 4096
# Max VMEM bytes for a resident transposed weight block (before any double
# buffering the pipeliner may add).
_W_RESIDENT_MAX_BYTES = 6 * 1024 * 1024
_VMEM_LIMIT_BYTES = 32 * 1024 * 1024


def _round_up(v: int, m: int) -> int:
    return (v + m - 1) // m * m


def _block_spec(shape, index_map, buffers=None):
    """BlockSpec with optional N-deep pipelining (fallback if unsupported)."""
    if buffers is None:
        return pl.BlockSpec(shape, index_map)
    try:
        return pl.BlockSpec(shape, index_map, pipeline_mode=pl.Buffered(buffers))
    except TypeError:
        return pl.BlockSpec(shape, index_map)


def _make_linear_kernel(F: int, TK: int, mask_tail: bool, w_transposed: bool):
    """Builds the kernel body for the chosen (static) tiling / weight layout."""

    def kernel(x_ref, w_ref, b_ref, o_ref):
        # x_ref: [TB, TK] bf16
        # w_ref: [12, Fp] bf16 (resident, transposed)  or  [TK, 12] bf16 (streamed)
        # b_ref: [1, 12] f32
        # o_ref: [TB, 12] f32, resident accumulator across the k axis
        k = pl.program_id(1)

        # Bias folded into the accumulator init (no k==last epilogue pass).
        @pl.when(k == 0)
        def _():
            o_ref[...] = jnp.broadcast_to(b_ref[...], o_ref.shape)

        x = x_ref[...]
        if mask_tail:
            # Last reduction tile reads past F in the *unpadded* activation;
            # zero those lanes so unspecified data (possibly NaN) cannot leak
            # into valid outputs.  For non-last tiles rem >= TK -> no-op mask.
            rem = F - k * TK
            col = lax.broadcasted_iota(jnp.int32, x.shape, dimension=1)
            x = jnp.where(col < rem, x, jnp.zeros_like(x))

        if w_transposed:
            # Weight resident in VMEM as (12, Fp); take the k-th TK-wide chunk.
            start = pl.multiple_of(k * TK, TK)
            w_blk = w_ref[:, pl.ds(start, TK)]                    # (12, TK)
            part = lax.dot_general(
                x, w_blk, (((1,), (1,)), ((), ())),
                preferred_element_type=jnp.float32)               # (TB, 12)
        else:
            part = jnp.dot(x, w_ref[...],
                           preferred_element_type=jnp.float32)    # (TB, 12)

        o_ref[...] += part

    return kernel


@jax.jit
def linear_pallas(x2d: jax.Array, w: jax.Array, b: jax.Array) -> jax.Array:
    """x2d: [B, F], w: [F, N], b: [N]  ->  [B, N] float32 logits."""
    B, F = x2d.shape
    N = w.shape[1]

    # HBM-side operands in bf16 (f32 accumulation happens in the kernel).
    x2d = x2d.astype(jnp.bfloat16)
    w = w.astype(jnp.bfloat16)
    b2d = b.reshape(1, N).astype(jnp.float32)

    # ---- batch tiling ------------------------------------------------------
    if B < 16:
        TB = B                                   # single tile (block == dim)
    elif B <= 2 * _TB_MAX:
        # >=2 grid steps on the "parallel" axis so v7x's second TC gets work.
        TB = _round_up(pl.cdiv(B, 2), 8)
    else:
        TB = _TB_MAX
    grid_b = pl.cdiv(B, TB)

    # ---- reduction tiling (activation is never padded in HBM) --------------
    TK = F if F <= _TK_MAX else _TK_MAX
    n_k = pl.cdiv(F, TK)
    Fp = n_k * TK
    mask_tail = Fp != F

    # ---- weight layout ------------------------------------------------------
    # Multi-k + multi-batch-tile: hold the narrow weight resident (transposed)
    # in VMEM so it is DMA'd once instead of once per batch tile.
    w_resident = (n_k > 1) and (grid_b > 1) and (32 * Fp <= _W_RESIDENT_MAX_BYTES)

    if mask_tail:
        # Tiny: pad only the weight so OOB x lanes (masked to 0) meet 0 rows.
        w = jnp.pad(w, ((0, Fp - F), (0, 0)))

    if w_resident:
        w_arg = w.T                                                  # (N, Fp)
        w_spec = pl.BlockSpec((N, Fp), lambda i, k: (0, 0))          # resident
    else:
        w_arg = w                                                    # (Fp, N)
        w_spec = pl.BlockSpec((TK, N), lambda i, k: (k, 0))          # streamed

    # Activation stream: 3-deep pipelining when the grid is long enough.
    x_buffers = 3 if grid_b * n_k >= 3 else None
    x_spec = _block_spec((TB, TK), lambda i, k: (i, k), buffers=x_buffers)
    b_spec = pl.BlockSpec((1, N), lambda i, k: (0, 0))
    o_spec = pl.BlockSpec((TB, N), lambda i, k: (i, 0))

    # Weight is re-streamed per batch tile only in the non-resident fallback.
    w_streams = grid_b if (n_k > 1 and grid_b > 1 and not w_resident) else 1
    cost = pl.CostEstimate(
        flops=2 * B * F * N,
        transcendentals=0,
        bytes_accessed=2 * B * F + 2 * Fp * N * w_streams + 4 * B * N + 4 * N,
    )

    kernel = _make_linear_kernel(F, TK, mask_tail, w_resident)

    return pl.pallas_call(
        kernel,
        out_shape=jax.ShapeDtypeStruct((B, N), jnp.float32),
        grid_spec=pltpu.PrefetchScalarGridSpec(
            num_scalar_prefetch=0,
            grid=(grid_b, n_k),
            in_specs=[x_spec, w_spec, b_spec],
            out_specs=o_spec,
        ),
        compiler_params=pltpu.CompilerParams(
            dimension_semantics=("parallel", "arbitrary"),
            vmem_limit_bytes=_VMEM_LIMIT_BYTES,
        ),
        cost_estimate=cost,
    )(x2d, w_arg, b2d)


class BaseModelJAX:
    """Minimal concrete BaseModel: flatten -> Linear(C*H*W, num_classes)."""

    def __init__(self, in_features: int, num_classes: int = NUM_CLASSES):
        self.num_classes = num_classes
        k_w, k_b = jax.random.split(jax.random.PRNGKey(0))
        bound = 1.0 / (in_features ** 0.5)
        self.w = jax.random.uniform(
            k_w, (in_features, num_classes), jnp.float32, -bound, bound
        ).astype(jnp.bfloat16)
        self.b = jax.random.uniform(
            k_b, (num_classes,), jnp.float32, -bound, bound)

    def forward(self, x: jax.Array) -> jax.Array:
        # x: NCHW [B, C, H, W]
        B = x.shape[0]
        x2d = x.reshape(B, -1)
        return linear_pallas(x2d, self.w, self.b)

    @classmethod
    def build_model(cls, **kwargs) -> "BaseModelJAX":
        return cls(**kwargs)


if __name__ == "__main__":
    # --- primary demo: small NCHW input through the model --------------------
    B, C, H, W = 2, 4, 16, 16
    x = jax.random.normal(jax.random.PRNGKey(0), (B, C, H, W), jnp.float32)

    model = BaseModelJAX.build_model(in_features=C * H * W,
                                     num_classes=NUM_CLASSES)
    out = model.forward(x)
    jax.block_until_ready(out)
    assert out.shape == (B, NUM_CLASSES), out.shape

    # Reference in plain JAX from the same bf16-rounded operands.
    x2d32 = x.reshape(B, -1).astype(jnp.bfloat16).astype(jnp.float32)
    w32 = model.w.astype(jnp.float32)
    ref = jnp.dot(x2d32, w32, precision=lax.Precision.HIGHEST) + model.b
    assert jnp.allclose(out, ref, atol=2e-2, rtol=2e-2), \
        float(jnp.max(jnp.abs(out - ref)))

    # --- secondary check: exercises multi-tile path (batch split, reduction
    #     tail mask, resident transposed weight) at still-small shapes. -------
    B2, F2 = 32, 4100
    k1, k2, k3 = jax.random.split(jax.random.PRNGKey(0), 3)
    x2 = jax.random.normal(k1, (B2, F2), jnp.float32)
    w2 = jax.random.uniform(k2, (F2, NUM_CLASSES), jnp.float32, -0.02, 0.02)
    b2 = jax.random.uniform(k3, (NUM_CLASSES,), jnp.float32, -0.02, 0.02)
    out2 = linear_pallas(x2, w2, b2)
    jax.block_until_ready(out2)
    ref2 = jnp.dot(x2.astype(jnp.bfloat16).astype(jnp.float32),
                   w2.astype(jnp.bfloat16).astype(jnp.float32),
                   precision=lax.Precision.HIGHEST) + b2
    assert out2.shape == (B2, NUM_CLASSES), out2.shape
    assert jnp.allclose(out2, ref2, atol=2e-2, rtol=2e-2), \
        float(jnp.max(jnp.abs(out2 - ref2)))

    print("KERNEL_OK")
</pallas_src>

<mosaic_0001>
module attributes {stable_mosaic.version = 11 : i64} {
  func.func @kernel(%arg0: i32, %arg1: i32, %arg2: memref<2x1024xbf16, #tpu.memory_space<vmem>>, %arg3: memref<1024x12xbf16, #tpu.memory_space<vmem>>, %arg4: memref<1x12xf32, #tpu.memory_space<vmem>>, %arg5: memref<2x12xf32, #tpu.memory_space<vmem>>) attributes {dimension_semantics = [#tpu.dimension_semantics<parallel>, #tpu.dimension_semantics<arbitrary>], iteration_bounds = array<i64: 1, 1>, scalar_prefetch = 0 : i64, scratch_operands = 0 : i64, tpu.core_type = #tpu.core_type<tc>, window_params = [{transform_indices = @transform_0, window_bounds = array<i64: 2, 1024>}, {transform_indices = @transform_1, window_bounds = array<i64: 1024, 12>}, {pipeline_mode = #tpu.pipeline_mode<synchronous>, transform_indices = @transform_2, window_bounds = array<i64: 1, 12>}, {transform_indices = @transform_3, window_bounds = array<i64: 2, 12>}]} {
    %c0_i32 = arith.constant 0 : i32
    %0 = arith.cmpi eq, %arg1, %c0_i32 : i32
    %1 = arith.extui %0 : i1 to i32
    %c0_i32_0 = arith.constant 0 : i32
    %2 = arith.cmpi ne, %1, %c0_i32_0 : i32
    scf.if %2 {
      %c0_8 = arith.constant 0 : index
      %c0_9 = arith.constant 0 : index
      %9 = vector.load %arg4[%c0_8, %c0_9] : memref<1x12xf32, #tpu.memory_space<vmem>>, vector<1x12xf32>
      %10 = vector.shape_cast %9 : vector<1x12xf32> to vector<1x12xf32>
      %11 = vector.broadcast %10 : vector<1x12xf32> to vector<2x12xf32>
      %c0_10 = arith.constant 0 : index
      %c0_11 = arith.constant 0 : index
      %12 = vector.load %arg5[%c0_10, %c0_11] : memref<2x12xf32, #tpu.memory_space<vmem>>, vector<2x12xf32>
      tpu.vector_store %arg5[%c0_10, %c0_11], %11 {strides = array<i32>} : memref<2x12xf32, #tpu.memory_space<vmem>>, vector<2x12xf32>,
    } else {
    }
    %c0 = arith.constant 0 : index
    %c0_1 = arith.constant 0 : index
    %3 = vector.load %arg2[%c0, %c0_1] : memref<2x1024xbf16, #tpu.memory_space<vmem>>, vector<2x1024xbf16>
    %c0_2 = arith.constant 0 : index
    %c0_3 = arith.constant 0 : index
    %4 = vector.load %arg3[%c0_2, %c0_3] : memref<1024x12xbf16, #tpu.memory_space<vmem>>, vector<1024x12xbf16>
    %cst = arith.constant dense<0.000000e+00> : vector<2x12xf32>
    %5 = tpu.matmul %3, %4, %cst {dimension_numbers = #tpu.dot_dimension_numbers<[1], [0], [0], [1], [0, 0, 1, 1], [], []>} : vector<2x1024xbf16>, vector<1024x12xbf16>, vector<2x12xf32> -> vector<2x12xf32>
    %c0_4 = arith.constant 0 : index
    %c0_5 = arith.constant 0 : index
    %6 = vector.load %arg5[%c0_4, %c0_5] : memref<2x12xf32, #tpu.memory_space<vmem>>, vector<2x12xf32>
    %7 = arith.addf %6, %5 : vector<2x12xf32>
    %c0_6 = arith.constant 0 : index
    %c0_7 = arith.constant 0 : index
    %8 = vector.load %arg5[%c0_6, %c0_7] : memref<2x12xf32, #tpu.memory_space<vmem>>, vector<2x12xf32>
    tpu.vector_store %arg5[%c0_6, %c0_7], %7 {strides = array<i32>} : memref<2x12xf32, #tpu.memory_space<vmem>>, vector<2x12xf32>,
    return
  }
  func.func @transform_0(%arg0: i32, %arg1: i32) -> (i32, i32) {
    %c0_i32 = arith.constant 0 : i32
    return %arg0, %arg1 : i32, i32
  }
  func.func @transform_1(%arg0: i32, %arg1: i32) -> (i32, i32) {
    %c0_i32 = arith.constant 0 : i32
    %c0_i32_0 = arith.constant 0 : i32
    return %arg1, %c0_i32 : i32, i32
  }
  func.func @transform_2(%arg0: i32, %arg1: i32) -> (i32, i32) {
    %c0_i32 = arith.constant 0 : i32
    %c0_i32_0 = arith.constant 0 : i32
    %c0_i32_1 = arith.constant 0 : i32
    return %c0_i32, %c0_i32_0 : i32, i32
  }
  func.func @transform_3(%arg0: i32, %arg1: i32) -> (i32, i32) {
    %c0_i32 = arith.constant 0 : i32
    %c0_i32_0 = arith.constant 0 : i32
    return %arg0, %c0_i32 : i32, i32
  }
}

</mosaic_0001>

<bundles_post_ra>
// kernel: linear_pallas.1
= control target key start
LH: loop header
LB: loop body
LE: loop exit
PB: predicated region body
PF: predicated region fallthrough
CT: control target
= control target key end

     0   :  { %v163_v28 = vlaneseq  ;;  %v1022_v36 = vmov 1966171168   ;;  %s1269_s0 = inlined_call_operand.vmem [shape: bf16[2,1024], index: 0, kind: input, shape index: {}]   ;;  %s1270_s1 = inlined_call_operand.vmem [shape: bf16[1024,12], index: 1, kind: input, shape index: {}]   ;;  %s1271_s2 = inlined_call_operand.vmem [shape: f32[1,12], index: 2, kind: input, shape index: {}]   ;;  %s1272_s3 = inlined_call_operand.hbm [shape: f32[2,12], index: 3, kind: output, shape index: {}]  }
   0x1   :  { %v933_v0 = vld [vmem:[%s1270_s1 + $0x40] sm:$0xff]   ;;  %v937_v4 = vld [vmem:[%s1270_s1 + $0x48] sm:$0xff]   ;;  %v941_v8 = vld [vmem:[%s1270_s1 + $0x50] sm:$0xff]   ;;  %v161_v37 = vunpack.c.l.s4 %v1022_v36 }
   0x2   :  { %v934_v1 = vld [vmem:[%s1270_s1 + $0xc0] sm:$0xff]   ;;  %843 = vmatprep.subr.bf16.mxu0 %v933_v0  ;;  %v938_v5 = vld [vmem:[%s1270_s1 + $0xc8] sm:$0xff]   ;;  %v942_v9 = vld [vmem:[%s1270_s1 + $0xd0] sm:$0xff]   ;;  %v164_v33 = vshrl.u32 %v163_v28, 7 }
   0x3   :  { %v935_v2 = vld [vmem:[%s1270_s1] sm:$0xff]   ;;  %865 = vmatprep.subr.bf16.mxu1 %v934_v1  ;;  %v939_v6 = vld [vmem:[%s1270_s1 + $0x8] sm:$0xff]   ;;  %v943_v10 = vld [vmem:[%s1270_s1 + $0x10] sm:$0xff]   ;;  %v162_v40 = vunpack.c.0.s8 %v161_v37 }
   0x4   :  { %v936_v3 = vld [vmem:[%s1270_s1 + $0x80] sm:$0xff]   ;;  %844 = vmatpush3.bf16.msra.mxu0 %v935_v2  ;;  %v940_v7 = vld [vmem:[%s1270_s1 + $0x88] sm:$0xff]   ;;  %v944_v11 = vld [vmem:[%s1270_s1 + $0x90] sm:$0xff]  }
   0x5   :  { %866 = vmatpush3.bf16.msra.mxu1 %v936_v3  ;;  %845 = vmatprep.subr.bf16.mxu0 %v937_v4  ;;  %v945_v12 = vld [vmem:[%s1270_s1 + $0x58] sm:$0xff]   ;;  %v949_v16 = vld [vmem:[%s1270_s1 + $0x60] sm:$0xff]   ;;  %v953_v20 = vld [vmem:[%s1270_s1 + $0x68] sm:$0xff]   ;;  %v1149_v41 = vsub.s32 %v162_v40, %v164_v33 }
   0x6   :  { %867 = vmatprep.subr.bf16.mxu1 %v938_v5  ;;  %v946_v13 = vld [vmem:[%s1270_s1 + $0xd8] sm:$0xff]   ;;  %v950_v17 = vld [vmem:[%s1270_s1 + $0xe0] sm:$0xff]   ;;  %v954_v21 = vld [vmem:[%s1270_s1 + $0xe8] sm:$0xff]  }
   0x7   :  { %v947_v14 = vld [vmem:[%s1270_s1 + $0x18] sm:$0xff]   ;;  %v951_v18 = vld [vmem:[%s1270_s1 + $0x20] sm:$0xff]   ;;  %v955_v22 = vld [vmem:[%s1270_s1 + $0x28] sm:$0xff]  }
   0x8   :  { %846 = vmatpush3.bf16.msra.mxu0 %v939_v6  ;;  %v948_v15 = vld [vmem:[%s1270_s1 + $0x98] sm:$0xff]   ;;  %v952_v19 = vld [vmem:[%s1270_s1 + $0xa0] sm:$0xff]   ;;  %v956_v23 = vld [vmem:[%s1270_s1 + $0xa8] sm:$0xff]  }
   0x9   :  { %868 = vmatpush3.bf16.msra.mxu1 %v940_v7  ;;  %847 = vmatprep.subr.bf16.mxu0 %v941_v8  ;;  %v957_v24 = vld [vmem:[%s1270_s1 + $0x70] sm:$0xff]   ;;  %v961_v29 = vld [vmem:[%s1270_s1 + $0x78] sm:$0xff]   ;;  %v29_v34 = vld [vmem:[%s1269_s0] sm:$0xff] }
   0xa   :  { %869 = vmatprep.subr.bf16.mxu1 %v942_v9  ;;  %v958_v25 = vld [vmem:[%s1270_s1 + $0xf0] sm:$0xff]   ;;  %v962_v30 = vld [vmem:[%s1270_s1 + $0xf8] sm:$0xff]   ;;  %v966_v35 = vld [vmem:[%s1270_s1 + $0x140] sm:$0xff]   ;;  %v159_v39 = vcombine.high %v29_v34, %v29_v34  ;;  %v166_v42 = vrot.slane %v29_v34, %v1149_v41 }
   0xb   :  { %v959_v26 = vld [vmem:[%s1270_s1 + $0x30] sm:$0xff]   ;;  %v963_v31 = vld [vmem:[%s1270_s1 + $0x38] sm:$0xff]   ;;  %v967_v38 = vld [vmem:[%s1270_s1 + $0x1c0] sm:$0xff]  }
   0xc   :  { %848 = vmatpush3.bf16.msra.mxu0 %v943_v10  ;;  %v960_v27 = vld [vmem:[%s1270_s1 + $0xb0] sm:$0xff]   ;;  %v964_v32 = vld [vmem:[%s1270_s1 + $0xb8] sm:$0xff]   ;;  %v1153_v43 = vrot.slane %v159_v39, %v1149_v41  ;;  %v174_v44 = vcombine.high %v166_v42, %v166_v42  ;;  %v182_v45 = vrot.slane %v166_v42, %v1149_v41  ;;  %v968_v48 = vld [vmem:[%s1270_s1 + $0x100] sm:$0xff]  }
   0xd   :  { %870 = vmatpush3.bf16.msra.mxu1 %v944_v11  ;;  %849 = vmatprep.subr.bf16.mxu0 %v945_v12  ;;  %v970_v51 = vld [vmem:[%s1270_s1 + $0x148] sm:$0xff]   ;;  %v969_v53 = vld [vmem:[%s1270_s1 + $0x180] sm:$0xff]   ;;  %v974_v57 = vld [vmem:[%s1270_s1 + $0x150] sm:$0xff]  }
   0xe   :  { %871 = vmatprep.subr.bf16.mxu1 %v946_v13  ;;  %v175_v46 = vcombine.high %v1153_v43, %v1153_v43  ;;  %v196_v47 = vrot.slane %v174_v44, %v1149_v41  ;;  %v204_v50 = vcombine.high %v182_v45, %v182_v45  ;;  %v971_v54 = vld [vmem:[%s1270_s1 + $0x1c8] sm:$0xff]   ;;  %v975_v59 = vld [vmem:[%s1270_s1 + $0x1d0] sm:$0xff]   ;;  %v978_v61 = vld [vmem:[%s1270_s1 + $0x158] sm:$0xff]  }
   0xf   :  { %v972_v56 = vld [vmem:[%s1270_s1 + $0x108] sm:$0xff]   ;;  %v976_v60 = vld [vmem:[%s1270_s1 + $0x110] sm:$0xff]   ;;  %v979_v63 = vld [vmem:[%s1270_s1 + $0x1d8] sm:$0xff]  }
  0x10   :  { %850 = vmatpush3.bf16.msra.mxu0 %v947_v14  ;;  %v203_v49 = vrot.slane %v175_v46, %v1149_v41  ;;  %632 = vmatprep.mubr.bf16.mxu0 %v196_v47  ;;  %v206_v52 = vcombine.high %v196_v47, %v196_v47  ;;  %v973_v58 = vld [vmem:[%s1270_s1 + $0x188] sm:$0xff]   ;;  %v977_v62 = vld [vmem:[%s1270_s1 + $0x190] sm:$0xff]   ;;  %v980_v0 = vld [vmem:[%s1270_s1 + $0x118] sm:$0xff]  }
  0x11   :  { %872 = vmatpush3.bf16.msra.mxu1 %v948_v15  ;;  %851 = vmatprep.subr.bf16.mxu0 %v949_v16  ;;  %v982_v1 = vld [vmem:[%s1270_s1 + $0x160] sm:$0xff]   ;;  %v981_v2 = vld [vmem:[%s1270_s1 + $0x198] sm:$0xff]   ;;  %v986_v5 = vld [vmem:[%s1270_s1 + $0x168] sm:$0xff]  }
  0x12   :  { %873 = vmatprep.subr.bf16.mxu1 %v950_v17  ;;  %v207_v55 = vcombine.high %v203_v49, %v203_v49  ;;  %672 = vmatprep.mubr.bf16.mxu1 %v206_v52  ;;  %v983_v3 = vld [vmem:[%s1270_s1 + $0x1e0] sm:$0xff]   ;;  %v987_v7 = vld [vmem:[%s1270_s1 + $0x1e8] sm:$0xff]   ;;  %v990_v9 = vld [vmem:[%s1270_s1 + $0x170] sm:$0xff]  }
  0x13   :  { %v984_v4 = vld [vmem:[%s1270_s1 + $0x120] sm:$0xff]   ;;  %v988_v8 = vld [vmem:[%s1270_s1 + $0x128] sm:$0xff]  }
  0x14   :  { %852 = vmatpush3.bf16.msra.mxu0 %v951_v18  ;;  %v985_v6 = vld [vmem:[%s1270_s1 + $0x1a0] sm:$0xff]  }
  0x15   :  { %874 = vmatpush3.bf16.msra.mxu1 %v952_v19  ;;  %853 = vmatprep.subr.bf16.mxu0 %v953_v20 }
  0x16   :  { %875 = vmatprep.subr.bf16.mxu1 %v954_v21 }
  0x18   :  { %854 = vmatpush3.bf16.msra.mxu0 %v955_v22 }
  0x19   :  { %876 = vmatpush3.bf16.msra.mxu1 %v956_v23  ;;  %855 = vmatprep.subr.bf16.mxu0 %v957_v24 }
  0x1a   :  { %877 = vmatprep.subr.bf16.mxu1 %v958_v25 }
  0x1c   :  { %856 = vmatpush3.bf16.msra.mxu0 %v959_v26 }
  0x1d   :  { %878 = vmatpush3.bf16.msra.mxu1 %v960_v27  ;;  %857 = vmatprep.subr.bf16.mxu0 %v961_v29 }
  0x1e   :  { %879 = vmatprep.subr.bf16.mxu1 %v962_v30 }
  0x20   :  { %858 = vmatpush3.bf16.msra.mxu0 %v963_v31 }
  0x21   :  { %880 = vmatpush3.bf16.msra.mxu1 %v964_v32  ;;  %887 = vmatprep.subr.bf16.mxu0 %v966_v35 }
  0x22   :  { %909 = vmatprep.subr.bf16.mxu1 %v967_v38 }
  0x23   :  { %633 = vmatmul.mubr.bf16.vlgmr.msra.gmra.mrb[0].mxu0 %v182_v45 }
  0x24   :  { %888 = vmatpush3.bf16.msra.mxu0 %v968_v48  ;;  %673 = vmatmul.mubr.bf16.vlgmr.msra.gmra.mrb[0].mxu1 %v204_v50 }
  0x25   :  { %889 = vmatprep.subr.bf16.mxu0 %v970_v51  ;;  %910 = vmatpush3.bf16.msra.mxu1 %v969_v53 }
  0x26   :  { %712 = vmatprep.mubr.bf16.mxu0 %v203_v49  ;;  %911 = vmatprep.subr.bf16.mxu1 %v971_v54 }
  0x27   :  { %752 = vmatprep.mubr.bf16.mxu1 %v207_v55 }
  0x28   :  { %890 = vmatpush3.bf16.msra.mxu0 %v972_v56 }
  0x29   :  { %891 = vmatprep.subr.bf16.mxu0 %v974_v57  ;;  %912 = vmatpush3.bf16.msra.mxu1 %v973_v58 }
  0x2a   :  { %913 = vmatprep.subr.bf16.mxu1 %v975_v59 }
  0x2c   :  { %892 = vmatpush3.bf16.msra.mxu0 %v976_v60 }
  0x2d   :  { %893 = vmatprep.subr.bf16.mxu0 %v978_v61  ;;  %914 = vmatpush3.bf16.msra.mxu1 %v977_v62 }
  0x2e   :  { %915 = vmatprep.subr.bf16.mxu1 %v979_v63 }
  0x30   :  { %894 = vmatpush3.bf16.msra.mxu0 %v980_v0 }
  0x31   :  { %895 = vmatprep.subr.bf16.mxu0 %v982_v1  ;;  %916 = vmatpush3.bf16.msra.mxu1 %v981_v2 }
  0x32   :  { %917 = vmatprep.subr.bf16.mxu1 %v983_v3 }
  0x34   :  { %896 = vmatpush3.bf16.msra.mxu0 %v984_v4 }
  0x35   :  { %897 = vmatprep.subr.bf16.mxu0 %v986_v5 }
  0x36   :  { %8 = vsyncpa [#allocation3], 0  ;;  %918 = vmatpush3.bf16.msra.mxu1 %v985_v6  ;;  %v989_v10 = vld [vmem:[%s1270_s1 + $0x1a8] sm:$0xff]   ;;  %v991_v11 = vld [vmem:[%s1270_s1 + $0x1f0] sm:$0xff]   ;;  %v189_v17 = vrot.slane %v1153_v43, %v1149_v41  ;;  %vm27_vm0 = vcmask 91136  }
  0x37   :  { %919 = vmatprep.subr.bf16.mxu1 %v987_v7  ;;  %v992_v12 = vld [vmem:[%s1270_s1 + $0x130] sm:$0xff]   ;;  %v994_v13 = vld [vmem:[%s1270_s1 + $0x178] sm:$0xff]   ;;  %v778_v20 = vld [vmem:[%s1271_s2] ss:$0 sm:$0xff] }
  0x38   :  { %898 = vmatpush3.bf16.msra.mxu0 %v988_v8  ;;  %v993_v14 = vld [vmem:[%s1270_s1 + $0x1b0] sm:$0xff]   ;;  %v995_v15 = vld [vmem:[%s1270_s1 + $0x1f8] sm:$0xff]   ;;  %v205_v19 = vcombine.high %v189_v17, %v189_v17  ;;  %28 = vst.msk [vmem:[#allocation2] sm:$0x3] %vm27_vm0, %v778_v20 }
  0x39   :  { %899 = vmatprep.subr.bf16.mxu0 %v990_v9  ;;  %v996_v16 = vld [vmem:[%s1270_s1 + $0x138] sm:$0xff]  }
  0x3a   :  { %920 = vmatpush3.bf16.msra.mxu1 %v989_v10  ;;  %v997_v18 = vld [vmem:[%s1270_s1 + $0x1b8] sm:$0xff]   ;;  %s1023_s1 = smov [#allocation2]  }
  0x3b   :  { %921 = vmatprep.subr.bf16.mxu1 %v991_v11  ;;  %s770_s2 = sshll.u32 %s1023_s1, 4  ;;  %s771_s2 = int_to_ptr.vmem [resolvable:$true] %s770_s2 }
  0x3c   :  { %900 = vmatpush3.bf16.msra.mxu0 %v992_v12  ;;  %s998_s6 = scalar_lea.vmem %s771_s2, 32  ;;  %p1003_p1 = scmp.lt.s32.totalorder %s771_s2, %s771_s2 }
  0x3d   :  { %901 = vmatprep.subr.bf16.mxu0 %v994_v13  ;;  %p999_p0 = scmp.ne.s32.totalorder %s771_s2, %s998_s6  ;;  %p1004_p2 = scmp.lt.s32.totalorder %s998_s6, %s998_s6 }
  0x3e   :  { %922 = vmatpush3.bf16.msra.mxu1 %v993_v14 }
  0x3f   :  { %923 = vmatprep.subr.bf16.mxu1 %v995_v15  ;;  %v760_v42 = vld [vmem:[#allocation2] sm:$0x3]  ;;  %p1005_p3 = por %p1004_p2, %p1003_p1 }
  0x40   :  { %902 = vmatpush3.bf16.msra.mxu0 %v996_v16 }
  0x41   :  { %p1006_p4 = pnand %p1005_p3, %p999_p0 }
  0x42   :  { %924 = vmatpush3.bf16.msra.mxu1 %v997_v18 }
  0x43   :  { %713 = vmatmul.mubr.bf16.vlgmr.msra.gmra.mrb[4].mxu0 %v189_v17 }
  0x45   :  { %753 = vmatmul.mubr.bf16.vlgmr.msra.gmra.mrb[4].mxu1 %v205_v19 }
  0xf6   :  { %v859_v21 = vpop.f32.mrb[0].mxu0 }
  0xf7   :  { %v860_v22 = vpop.f32.mrb[1].mxu0  ;;  %v881_v23 = vpop.f32.mrb[0].mxu1 }
  0xf8   :  { %v861_v24 = vadd.f32 %v860_v22, %v859_v21  ;;  %v862_v25 = vpop.f32.mrb[2].mxu0  ;;  %v882_v26 = vpop.f32.mrb[1].mxu1 }
  0xf9   :  { %v863_v27 = vpop.f32.mrb[3].mxu0  ;;  %v883_v28 = vadd.f32 %v882_v26, %v881_v23  ;;  %v884_v29 = vpop.f32.mrb[2].mxu1 }
  0xfa   :  { %v885_v30 = vpop.f32.mrb[3].mxu1 }
  0xfb   :  { %v675_v31 = vadd.f32 %v883_v28, %v861_v24 }
 0x116   :  { %v903_v32 = vpop.f32.mrb[4].mxu0 }
 0x117   :  { %v904_v33 = vpop.f32.mrb[5].mxu0 }
 0x118   :  { %v925_v34 = vpop.f32.mrb[4].mxu1  ;;  %v905_v35 = vadd.f32 %v904_v33, %v903_v32  ;;  %v906_v36 = vpop.f32.mrb[6].mxu0 }
 0x119   :  { %v926_v37 = vpop.f32.mrb[5].mxu1  ;;  %v907_v38 = vpop.f32.mrb[7].mxu0 }
 0x11a   :  { %v715_v39 = vadd.f32 %v905_v35, %v675_v31  ;;  %v927_v40 = vadd.f32 %v926_v37, %v925_v34  ;;  %v928_v41 = vpop.f32.mrb[6].mxu1 }
 0x11b   :  { %v929_v43 = vpop.f32.mrb[7].mxu1 }
 0x11c   :  { %v755_v44 = vadd.f32 %v927_v40, %v715_v39 }
 0x11e   :  { %v761_v45 = vadd.f32 %v760_v42, %v755_v44 }
 0x120   :  { %763 = vst.msk [vmem:[#allocation2] sm:$0x3] %vm27_vm0, %v761_v45 }
 0x121   :  { %1009 = shalt.err (!%p1006_p4)
}
 0x122   :  { %s1010_s9 = scalar_lea.hbm %s1272_s3, 32 }
 0x123   :  { %p1011_p5 = scmp.ne.s32.totalorder %s1272_s3, %s1010_s9  ;;  %p1014_p6 = scmp.lt.u32.totalorder %s1010_s9, %s1272_s3 }
 0x125   :  { %p1016_p7 = pnand %p1014_p6, %p1011_p5 }
 0x127   :  { %1019 = shalt.err (!%p1016_p7)
}
 0x128   :  { %773 = dma.vmem_to_hbm [thread:$0]  %s771_s2, 32, %s1272_s3, [#allocation3]  }
 0x129   :  { %1020 = dma.done.wait [#allocation3], 32  }
 0x12a   :  { %1021 = vsyncadd [#allocation3], 4294967264 }
 0x12b   :  { %777 = vsyncpa [#allocation3], 1 }

</bundles_post_ra>
